<compile_context>
chip_gen: v5e
topology: v5e:2x2
jax: 0.10.0
libtpu: 0.0.40
codegen_flags: <defaults>
</compile_context>

<pallas_src>
import functools

import jax
import jax.numpy as jnp
from jax.experimental import pallas as pl
from jax.experimental.pallas import tpu as pltpu


# ------------------------- hardware-aware sizing -------------------------

@functools.lru_cache(maxsize=1)
def _vmem_limit_bytes():
    """Per-generation scoped-VMEM budget (v7x: 32 MiB, v5e/v6e: 64 MiB)."""
    try:
        cap = int(pltpu.get_tpu_info().vmem_capacity_bytes)
    except Exception:
        cap = 64 * 1024 * 1024
    return int(max(32 * 1024 * 1024, min(cap // 2, 96 * 1024 * 1024)))


# ------------------------- Pallas kernels -------------------------

def _make_tv_kernel(n_rt, Hb, W):
    """Unweighted TV partial sums. Output lanes: [0]=sum|dy|, [1]=sum|dx|."""

    def kernel(p_ref, o_ref, acc_ref, pprev_ref):
        rt = pl.program_id(1)
        x = p_ref[...].astype(jnp.float32)                       # (Gb, Hb, W)

        @pl.when(rt == 0)
        def _init():
            acc_ref[...] = jnp.zeros_like(acc_ref)
            pprev_ref[...] = x[:, 0:1, :]                        # seam diff -> 0 at rt==0

        row_ids = jax.lax.broadcasted_iota(jnp.int32, (1, Hb, W), 1)
        lane_ids = jax.lax.broadcasted_iota(jnp.int32, (1, Hb, W), 2)

        # within-tile neighbor diffs via XLU roll + edge masks
        dy = jnp.where(row_ids < Hb - 1, x - pltpu.roll(x, shift=Hb - 1, axis=1), 0.0)
        dx = jnp.where(lane_ids < W - 1, x - pltpu.roll(x, shift=W - 1, axis=2), 0.0)
        # vertical seam with the previous row tile (zero contribution at rt==0)
        dsm = pprev_ref[...] - x[:, 0:1, :]

        y_abs = jnp.sum(jnp.abs(dy)) + jnp.sum(jnp.abs(dsm))
        x_abs = jnp.sum(jnp.abs(dx))

        pprev_ref[...] = x[:, Hb - 1:Hb, :]                      # carry for next tile

        lane128 = jax.lax.broadcasted_iota(jnp.int32, (1, 1, 128), 2)
        acc_ref[...] += (jnp.where(lane128 == 0, y_abs, 0.0)
                         + jnp.where(lane128 == 1, x_abs, 0.0))

        @pl.when(rt == n_rt - 1)
        def _flush():
            o_ref[...] = acc_ref[...]

    return kernel


def _make_weighted_tv_kernel(n_rt, Hb, W):
    """Weighted TV partial sums.

    Output lanes: [0]=sum|dy|, [1]=sum|dy*w|, [2]=sum|dx|, [3]=sum|dx*w|,
                  [4]=sum w[:-1,:], [5]=sum w[:,:-1]   (per weight-block visit).
    """

    def kernel(p_ref, w_ref, o_ref, acc_ref, pprev_ref, wprev_ref):
        rt = pl.program_id(1)
        x = p_ref[...].astype(jnp.float32)                       # (Gb, Hb, W)
        w = w_ref[...].astype(jnp.float32)                       # (Gw, Hb, W), Gw in {1, Gb}

        @pl.when(rt == 0)
        def _init():
            acc_ref[...] = jnp.zeros_like(acc_ref)
            pprev_ref[...] = x[:, 0:1, :]
            wprev_ref[...] = w[:, 0:1, :]

        row_ids = jax.lax.broadcasted_iota(jnp.int32, (1, Hb, W), 1)
        lane_ids = jax.lax.broadcasted_iota(jnp.int32, (1, Hb, W), 2)
        row_valid = row_ids < (Hb - 1)
        lane_valid = lane_ids < (W - 1)

        dy = jnp.where(row_valid, x - pltpu.roll(x, shift=Hb - 1, axis=1), 0.0)
        dx = jnp.where(lane_valid, x - pltpu.roll(x, shift=W - 1, axis=2), 0.0)
        dsm = pprev_ref[...] - x[:, 0:1, :]                      # seam (0 at rt==0)

        y_abs = jnp.sum(jnp.abs(dy)) + jnp.sum(jnp.abs(dsm))
        y_wabs = jnp.sum(jnp.abs(dy * w)) + jnp.sum(jnp.abs(dsm * wprev_ref[...]))
        x_abs = jnp.sum(jnp.abs(dx))
        x_wabs = jnp.sum(jnp.abs(dx * w))

        # weight-denominator partials (exclude the plane's last row / last col)
        y_w_valid = jnp.logical_or(rt != (n_rt - 1), row_valid)
        y_wsum = jnp.sum(jnp.where(y_w_valid, w, 0.0))
        x_wsum = jnp.sum(jnp.where(lane_valid, w, 0.0))

        pprev_ref[...] = x[:, Hb - 1:Hb, :]
        wprev_ref[...] = w[:, Hb - 1:Hb, :]

        lane128 = jax.lax.broadcasted_iota(jnp.int32, (1, 1, 128), 2)
        acc_ref[...] += (jnp.where(lane128 == 0, y_abs, 0.0)
                         + jnp.where(lane128 == 1, y_wabs, 0.0)
                         + jnp.where(lane128 == 2, x_abs, 0.0)
                         + jnp.where(lane128 == 3, x_wabs, 0.0)
                         + jnp.where(lane128 == 4, y_wsum, 0.0)
                         + jnp.where(lane128 == 5, x_wsum, 0.0))

        @pl.when(rt == n_rt - 1)
        def _flush():
            o_ref[...] = acc_ref[...]

    return kernel


# ------------------------- block-size selection -------------------------

def _choose_tiling(G, C, H, W, g_div, target_bytes):
    """Pick (Gb planes per chunk, Hb rows per tile). Gb | g_div, Hb | H."""
    plane_bytes = H * W * 4                                      # f32 working set
    if plane_bytes <= target_bytes:
        Hb = H
        max_gb = max(1, target_bytes // plane_bytes)
        Gb = 1
        for d in range(1, g_div + 1):
            if g_div % d == 0 and d <= max_gb:
                Gb = d
    else:
        Gb = 1
        best = None
        for d in range(8, H, 8):                                 # multiple-of-8 divisor of H
            if H % d == 0 and d * W * 4 <= target_bytes:
                best = d
        # TODO(synk): if H has no multiple-of-8 divisor that fits, fall back to a
        # full-plane block (may exceed the target for very large ragged planes).
        Hb = best if best is not None else H
    return Gb, Hb


# ------------------------- wrapper -------------------------

def weighted_tv_loss(pred, weight=None, loss_weight=1.0, block_bytes_target=None):
    """pred: (N, C, H, W); weight: None, (N, C, H, W) or (N, 1, H, W)."""
    pred = jnp.asarray(pred)
    N, C, H, W = pred.shape
    G = N * C
    pred3 = pred.reshape(G, H, W)
    count_y = float(G) * float(H - 1) * float(W)                 # elems in pred[:, :, :-1, :]
    count_x = float(G) * float(H) * float(W - 1)                 # elems in pred[:, :, :, :-1]

    vmem_limit = _vmem_limit_bytes()
    target = int(block_bytes_target) if block_bytes_target else max(vmem_limit // 16, 256 * 1024)

    compiler_params = pltpu.CompilerParams(
        dimension_semantics=("parallel", "arbitrary"),
        vmem_limit_bytes=vmem_limit,
    )

    # ---------------- weight plumbing ----------------
    wrapper_wsums = None
    if weight is None:
        mode = None
        g_div = G
    else:
        weight = jax.lax.stop_gradient(jnp.asarray(weight))      # weight.detach()
        if weight.shape == (N, C, H, W):
            mode, w3, g_div = "full", weight.reshape(G, H, W), G
        elif weight.shape == (N, 1, H, W):
            mode, w3, g_div = "bcast", weight.reshape(N, H, W), C
        else:
            # TODO(synk): exotic broadcastable weight shapes: numerator uses the
            # broadcast weight; PyTorch's denominator (sum of the original,
            # un-broadcast weight slices) is kept as a cheap wrapper-side sum.
            mode, g_div = "full", G
            w32 = weight.astype(jnp.float32)
            wrapper_wsums = (jnp.sum(w32[:, :, :-1, :]), jnp.sum(w32[:, :, :, :-1]))
            w3 = jnp.broadcast_to(weight, (N, C, H, W)).reshape(G, H, W)

    Gb, Hb = _choose_tiling(G, C, H, W, g_div, target)
    assert G % Gb == 0 and H % Hb == 0
    num_gc = G // Gb
    num_rt = H // Hb

    # ---------------- unweighted path ----------------
    if weight is None:
        partials = pl.pallas_call(
            _make_tv_kernel(num_rt, Hb, W),
            out_shape=jax.ShapeDtypeStruct((num_gc, 1, 128), jnp.float32),
            grid_spec=pltpu.PrefetchScalarGridSpec(
                num_scalar_prefetch=0,
                grid=(num_gc, num_rt),
                in_specs=[pl.BlockSpec((Gb, Hb, W), lambda gc, rt: (gc, rt, 0))],
                out_specs=pl.BlockSpec((1, 1, 128), lambda gc, rt: (gc, 0, 0)),
                scratch_shapes=[pltpu.VMEM((1, 1, 128), jnp.float32),
                                pltpu.VMEM((Gb, 1, W), jnp.float32)],
            ),
            compiler_params=compiler_params,
        )(pred3)
        sums = jnp.sum(partials.reshape(num_gc, 128), axis=0)
        y_diff = loss_weight * sums[0] / count_y
        x_diff = loss_weight * sums[1] / count_x
        return x_diff + y_diff

    # ---------------- weighted path ----------------
    if mode == "bcast":
        assert C % Gb == 0
        Gw = 1
        rep = C // Gb                                            # weight plane visits per image
        w_index_map = lambda gc, rt: ((gc * Gb) // C, rt, 0)
    else:
        Gw = Gb
        rep = 1
        w_index_map = lambda gc, rt: (gc, rt, 0)

    partials = pl.pallas_call(
        _make_weighted_tv_kernel(num_rt, Hb, W),
        out_shape=jax.ShapeDtypeStruct((num_gc, 1, 128), jnp.float32),
        grid_spec=pltpu.PrefetchScalarGridSpec(
            num_scalar_prefetch=0,
            grid=(num_gc, num_rt),
            in_specs=[
                pl.BlockSpec((Gb, Hb, W), lambda gc, rt: (gc, rt, 0)),
                pl.BlockSpec((Gw, Hb, W), w_index_map),
            ],
            out_specs=pl.BlockSpec((1, 1, 128), lambda gc, rt: (gc, 0, 0)),
            scratch_shapes=[pltpu.VMEM((1, 1, 128), jnp.float32),
                            pltpu.VMEM((Gb, 1, W), jnp.float32),
                            pltpu.VMEM((Gw, 1, W), jnp.float32)],
        ),
        compiler_params=compiler_params,
    )(pred3, w3)

    sums = jnp.sum(partials.reshape(num_gc, 128), axis=0)
    y_abs, y_wabs, x_abs, x_wabs = sums[0], sums[1], sums[2], sums[3]
    if wrapper_wsums is not None:
        y_wsum, x_wsum = wrapper_wsums
    else:
        y_wsum = sums[4] / rep                                   # undo per-chunk weight re-visits
        x_wsum = sums[5] / rep

    # weight_sum < 0.001 fallback (per term), as in the PyTorch L1Loss.
    y_num = jnp.where(y_wsum < 0.001, y_abs, y_wabs)
    y_den = jnp.where(y_wsum < 0.001, count_y, y_wsum)
    x_num = jnp.where(x_wsum < 0.001, x_abs, x_wabs)
    x_den = jnp.where(x_wsum < 0.001, count_x, x_wsum)

    y_diff = loss_weight * y_num / y_den
    x_diff = loss_weight * x_num / x_den
    return x_diff + y_diff


class WeightedTVLoss:
    """JAX/Pallas re-implementation of basicsr WeightedTVLoss.forward."""

    def __init__(self, loss_weight=1.0):
        self.loss_weight = float(loss_weight)
        self.reduction = "mean"

    def __call__(self, pred, weight=None):
        return weighted_tv_loss(pred, weight=weight, loss_weight=self.loss_weight)


# ------------------------- pure-JAX reference (demo check) -------------------------

def _reference_tv_loss(pred, weight=None, loss_weight=1.0):
    def l1(p, t, w):
        unweighted = loss_weight * jnp.mean(jnp.abs(p - t))
        if w is None:
            return unweighted
        ws = jnp.sum(w.astype(jnp.float32))
        safe_ws = jnp.where(ws < 0.001, jnp.float32(1.0), ws)
        weighted = loss_weight * jnp.sum(jnp.abs((p - t) * w)) / safe_ws
        return jnp.where(ws < 0.001, unweighted, weighted)

    yw = None if weight is None else weight[:, :, :-1, :]
    xw = None if weight is None else weight[:, :, :, :-1]
    y = l1(pred[:, :, :-1, :], pred[:, :, 1:, :], yw)
    x = l1(pred[:, :, :, :-1], pred[:, :, :, 1:], xw)
    return x + y


# ------------------------- demo -------------------------

if __name__ == "__main__":
    key = jax.random.PRNGKey(0)
    kp, kw, kwf = jax.random.split(key, 3)

    # PyTorch-style NCHW input (n=2, c=4, h=w=16).
    pred = jax.random.uniform(kp, (2, 4, 16, 16), jnp.float32)
    w_bcast = jax.random.uniform(kw, (2, 1, 16, 16), jnp.float32)   # channel-broadcast weight
    w_full = jax.random.uniform(kwf, (2, 4, 16, 16), jnp.float32)   # full-shape weight

    loss_mod = WeightedTVLoss(loss_weight=1.0)

    cases = [
        ("unweighted", None, None),
        ("weight_bcast", w_bcast, None),
        ("weight_full", w_full, None),
        ("weight_bcast_rowtiled", w_bcast, 512),          # force row tiling + seam carry
        ("weight_zero_fallback", jnp.zeros_like(w_bcast), None),
    ]
    for name, w, blk in cases:
        got = jax.block_until_ready(
            weighted_tv_loss(pred, weight=w, loss_weight=1.0, block_bytes_target=blk))
        ref = _reference_tv_loss(pred, w, 1.0)
        assert bool(jnp.isfinite(got)), name
        assert bool(jnp.allclose(got, ref, rtol=1e-5, atol=1e-6)), (name, float(got), float(ref))

    # class-style entry point, as in the PyTorch module
    got_mod = jax.block_until_ready(loss_mod(pred, weight=w_bcast))
    assert bool(jnp.allclose(got_mod, _reference_tv_loss(pred, w_bcast, 1.0),
                             rtol=1e-5, atol=1e-6))

    print("KERNEL_OK")
</pallas_src>

<mosaic_0001>
module attributes {stable_mosaic.version = 11 : i64} {
  func.func @kernel(%arg0: i32, %arg1: i32, %arg2: memref<8x16x16xf32, #tpu.memory_space<vmem>>, %arg3: memref<1x1x128xf32, #tpu.memory_space<vmem>>, %arg4: memref<1x1x128xf32, #tpu.memory_space<vmem>>, %arg5: memref<8x1x16xf32, #tpu.memory_space<vmem>>) attributes {dimension_semantics = [#tpu.dimension_semantics<parallel>, #tpu.dimension_semantics<arbitrary>], iteration_bounds = array<i64: 1, 1>, scalar_prefetch = 0 : i64, scratch_operands = 2 : i64, tpu.core_type = #tpu.core_type<tc>, window_params = [{transform_indices = @transform_0, window_bounds = array<i64: 8, 16, 16>}, {transform_indices = @transform_1, window_bounds = array<i64: 1, 1, 128>}]} {
    %c0 = arith.constant 0 : index
    %c0_0 = arith.constant 0 : index
    %c0_1 = arith.constant 0 : index
    %0 = vector.load %arg2[%c0, %c0_0, %c0_1] : memref<8x16x16xf32, #tpu.memory_space<vmem>>, vector<8x16x16xf32>
    %c0_i32 = arith.constant 0 : i32
    %1 = arith.cmpi eq, %arg1, %c0_i32 : i32
    %2 = arith.extui %1 : i1 to i32
    %c0_i32_2 = arith.constant 0 : i32
    %3 = arith.cmpi ne, %2, %c0_i32_2 : i32
    scf.if %3 {
      %cst_27 = arith.constant 0.000000e+00 : f32
      %61 = vector.broadcast %cst_27 : f32 to vector<1x1x128xf32>
      %c0_28 = arith.constant 0 : index
      %c0_29 = arith.constant 0 : index
      %c0_30 = arith.constant 0 : index
      %62 = vector.load %arg4[%c0_28, %c0_29, %c0_30] : memref<1x1x128xf32, #tpu.memory_space<vmem>>, vector<1x1x128xf32>
      tpu.vector_store %arg4[%c0_28, %c0_29, %c0_30], %61 {strides = array<i32>} : memref<1x1x128xf32, #tpu.memory_space<vmem>>, vector<1x1x128xf32>,
      %63 = vector.extract_strided_slice %0 {offsets = [0, 0, 0], sizes = [8, 1, 16], strides = [1, 1, 1]} : vector<8x16x16xf32> to vector<8x1x16xf32>
      %c0_31 = arith.constant 0 : index
      %c0_32 = arith.constant 0 : index
      %c0_33 = arith.constant 0 : index
      %64 = vector.load %arg5[%c0_31, %c0_32, %c0_33] : memref<8x1x16xf32, #tpu.memory_space<vmem>>, vector<8x1x16xf32>
      tpu.vector_store %arg5[%c0_31, %c0_32, %c0_33], %63 {strides = array<i32>} : memref<8x1x16xf32, #tpu.memory_space<vmem>>, vector<8x1x16xf32>,
    } else {
    }
    %4 = tpu.iota {dimensions = array<i32: 1>} : vector<1x16x16xi32>
    %5 = tpu.iota {dimensions = array<i32: 2>} : vector<1x16x16xi32>
    %c15_i32 = arith.constant 15 : i32
    %6 = vector.broadcast %c15_i32 : i32 to vector<1x16x16xi32>
    %7 = arith.cmpi slt, %4, %6 : vector<1x16x16xi32>
    %c15_i32_3 = arith.constant 15 : i32
    %8 = tpu.dynamic_rotate %0 by %c15_i32_3 dim 1 : vector<8x16x16xf32>, i32 -> vector<8x16x16xf32>
    %9 = arith.subf %0, %8 : vector<8x16x16xf32>
    %cst = arith.constant 0.000000e+00 : f32
    %10 = vector.shape_cast %7 : vector<1x16x16xi1> to vector<1x16x16xi1>
    %11 = vector.broadcast %10 : vector<1x16x16xi1> to vector<8x16x16xi1>
    %12 = vector.broadcast %cst : f32 to vector<8x16x16xf32>
    %13 = arith.select %11, %9, %12 : vector<8x16x16xi1>, vector<8x16x16xf32>
    %c15_i32_4 = arith.constant 15 : i32
    %14 = vector.broadcast %c15_i32_4 : i32 to vector<1x16x16xi32>
    %15 = arith.cmpi slt, %5, %14 : vector<1x16x16xi32>
    %c15_i32_5 = arith.constant 15 : i32
    %16 = tpu.dynamic_rotate %0 by %c15_i32_5 dim 2 : vector<8x16x16xf32>, i32 -> vector<8x16x16xf32>
    %17 = arith.subf %0, %16 : vector<8x16x16xf32>
    %cst_6 = arith.constant 0.000000e+00 : f32
    %18 = vector.shape_cast %15 : vector<1x16x16xi1> to vector<1x16x16xi1>
    %19 = vector.broadcast %18 : vector<1x16x16xi1> to vector<8x16x16xi1>
    %20 = vector.broadcast %cst_6 : f32 to vector<8x16x16xf32>
    %21 = arith.select %19, %17, %20 : vector<8x16x16xi1>, vector<8x16x16xf32>
    %c0_7 = arith.constant 0 : index
    %c0_8 = arith.constant 0 : index
    %c0_9 = arith.constant 0 : index
    %22 = vector.load %arg5[%c0_7, %c0_8, %c0_9] : memref<8x1x16xf32, #tpu.memory_space<vmem>>, vector<8x1x16xf32>
    %23 = vector.extract_strided_slice %0 {offsets = [0, 0, 0], sizes = [8, 1, 16], strides = [1, 1, 1]} : vector<8x16x16xf32> to vector<8x1x16xf32>
    %24 = arith.subf %22, %23 : vector<8x1x16xf32>
    %25 = math.absf %13 : vector<8x16x16xf32>
    %26 = vector.shape_cast %25 : vector<8x16x16xf32> to vector<1x8x16x16xf32>
    %cst_10 = arith.constant dense<0.000000e+00> : vector<1xf32>
    %27 = vector.multi_reduction <add>, %26, %cst_10 [1, 2, 3] : vector<1x8x16x16xf32> to vector<1xf32>
    %28 = vector.shape_cast %27 : vector<1xf32> to vector<1x1x1x1xf32>
    %29 = vector.extract %28[0, 0, 0, 0] : f32 from vector<1x1x1x1xf32>
    %30 = math.absf %24 : vector<8x1x16xf32>
    %31 = vector.shape_cast %30 : vector<8x1x16xf32> to vector<1x8x1x16xf32>
    %cst_11 = arith.constant dense<0.000000e+00> : vector<1xf32>
    %32 = vector.multi_reduction <add>, %31, %cst_11 [1, 2, 3] : vector<1x8x1x16xf32> to vector<1xf32>
    %33 = vector.shape_cast %32 : vector<1xf32> to vector<1x1x1x1xf32>
    %34 = vector.extract %33[0, 0, 0, 0] : f32 from vector<1x1x1x1xf32>
    %35 = arith.addf %29, %34 : f32
    %36 = math.absf %21 : vector<8x16x16xf32>
    %37 = vector.shape_cast %36 : vector<8x16x16xf32> to vector<1x8x16x16xf32>
    %cst_12 = arith.constant dense<0.000000e+00> : vector<1xf32>
    %38 = vector.multi_reduction <add>, %37, %cst_12 [1, 2, 3] : vector<1x8x16x16xf32> to vector<1xf32>
    %39 = vector.shape_cast %38 : vector<1xf32> to vector<1x1x1x1xf32>
    %40 = vector.extract %39[0, 0, 0, 0] : f32 from vector<1x1x1x1xf32>
    %41 = vector.extract_strided_slice %0 {offsets = [0, 15, 0], sizes = [8, 1, 16], strides = [1, 1, 1]} : vector<8x16x16xf32> to vector<8x1x16xf32>
    %c0_13 = arith.constant 0 : index
    %c0_14 = arith.constant 0 : index
    %c0_15 = arith.constant 0 : index
    %42 = vector.load %arg5[%c0_13, %c0_14, %c0_15] : memref<8x1x16xf32, #tpu.memory_space<vmem>>, vector<8x1x16xf32>
    tpu.vector_store %arg5[%c0_13, %c0_14, %c0_15], %41 {strides = array<i32>} : memref<8x1x16xf32, #tpu.memory_space<vmem>>, vector<8x1x16xf32>,
    %43 = tpu.iota {dimensions = array<i32: 2>} : vector<1x1x128xi32>
    %c0_16 = arith.constant 0 : index
    %c0_17 = arith.constant 0 : index
    %c0_18 = arith.constant 0 : index
    %44 = vector.load %arg4[%c0_16, %c0_17, %c0_18] : memref<1x1x128xf32, #tpu.memory_space<vmem>>, vector<1x1x128xf32>
    %c0_i32_19 = arith.constant 0 : i32
    %45 = vector.broadcast %c0_i32_19 : i32 to vector<1x1x128xi32>
    %46 = arith.cmpi eq, %43, %45 : vector<1x1x128xi32>
    %cst_20 = arith.constant 0.000000e+00 : f32
    %47 = vector.broadcast %35 : f32 to vector<1x1x128xf32>
    %48 = vector.broadcast %cst_20 : f32 to vector<1x1x128xf32>
    %49 = arith.select %46, %47, %48 : vector<1x1x128xi1>, vector<1x1x128xf32>
    %c1_i32 = arith.constant 1 : i32
    %50 = vector.broadcast %c1_i32 : i32 to vector<1x1x128xi32>
    %51 = arith.cmpi eq, %43, %50 : vector<1x1x128xi32>
    %cst_21 = arith.constant 0.000000e+00 : f32
    %52 = vector.broadcast %40 : f32 to vector<1x1x128xf32>
    %53 = vector.broadcast %cst_21 : f32 to vector<1x1x128xf32>
    %54 = arith.select %51, %52, %53 : vector<1x1x128xi1>, vector<1x1x128xf32>
    %55 = arith.addf %49, %54 : vector<1x1x128xf32>
    %56 = arith.addf %44, %55 : vector<1x1x128xf32>
    %c0_22 = arith.constant 0 : index
    %c0_23 = arith.constant 0 : index
    %c0_24 = arith.constant 0 : index
    %57 = vector.load %arg4[%c0_22, %c0_23, %c0_24] : memref<1x1x128xf32, #tpu.memory_space<vmem>>, vector<1x1x128xf32>
    tpu.vector_store %arg4[%c0_22, %c0_23, %c0_24], %56 {strides = array<i32>} : memref<1x1x128xf32, #tpu.memory_space<vmem>>, vector<1x1x128xf32>,
    %c0_i32_25 = arith.constant 0 : i32
    %58 = arith.cmpi eq, %arg1, %c0_i32_25 : i32
    %59 = arith.extui %58 : i1 to i32
    %c0_i32_26 = arith.constant 0 : i32
    %60 = arith.cmpi ne, %59, %c0_i32_26 : i32
    scf.if %60 {
      %c0_27 = arith.constant 0 : index
      %c0_28 = arith.constant 0 : index
      %c0_29 = arith.constant 0 : index
      %61 = vector.load %arg4[%c0_27, %c0_28, %c0_29] : memref<1x1x128xf32, #tpu.memory_space<vmem>>, vector<1x1x128xf32>
      %c0_30 = arith.constant 0 : index
      %c0_31 = arith.constant 0 : index
      %c0_32 = arith.constant 0 : index
      %62 = vector.load %arg3[%c0_30, %c0_31, %c0_32] : memref<1x1x128xf32, #tpu.memory_space<vmem>>, vector<1x1x128xf32>
      tpu.vector_store %arg3[%c0_30, %c0_31, %c0_32], %61 {strides = array<i32>} : memref<1x1x128xf32, #tpu.memory_space<vmem>>, vector<1x1x128xf32>,
    } else {
    }
    return
  }
  func.func @transform_0(%arg0: i32, %arg1: i32) -> (i32, i32, i32) {
    %c0_i32 = arith.constant 0 : i32
    %c0_i32_0 = arith.constant 0 : i32
    return %arg0, %arg1, %c0_i32 : i32, i32, i32
  }
  func.func @transform_1(%arg0: i32, %arg1: i32) -> (i32, i32, i32) {
    %c0_i32 = arith.constant 0 : i32
    %c0_i32_0 = arith.constant 0 : i32
    %c0_i32_1 = arith.constant 0 : i32
    return %arg0, %c0_i32, %c0_i32_0 : i32, i32, i32
  }
}

</mosaic_0001>

<bundles_post_ra>
// kernel: tpu_custom_call.1
= control target key start
LH: loop header
LB: loop body
LE: loop exit
PB: predicated region body
PF: predicated region fallthrough
CT: control target
= control target key end

     0   :  { %6 = vsyncpa [#allocation5], 0  ;;  %s999_s0 = inlined_call_operand.hbm [shape: f32[8,16,16], index: 0, kind: input, shape index: {}]   ;;  %s1000_s1 = inlined_call_operand.hbm [shape: f32[1,1,128], index: 1, kind: output, shape index: {}]  }
   0x1   :  { %7 = vsyncpa [#allocation6], 0  ;;  %s12_s8 = sshll.u32 %s999_s0, 4  ;;  %s596_s9 = smov [#allocation4]   ;;  %s13_s8 = int_to_ptr.hbm [resolvable:$true] %s12_s8 }
   0x2   :  { %s14_s10 = sshll.u32 %s596_s9, 4  ;;  %s597_s11 = smov 128   ;;  %s15_s10 = int_to_ptr.vmem [resolvable:$true] %s14_s10 }
   0x3   :  { %s598_s12 = smov 8  }
   0x4   :  { %20 = dma.hbm_to_vmem [thread:$0]  %s13_s8, 2048, %s15_s10, [#allocation5], %s597_s11, %s597_s11, %s598_s12  }
   0x5   :  { %592 = dma.done.wait [#allocation5], 2048  }
   0x6   :  { %593 = vsyncadd [#allocation5], 4294965248  ;;  %v616_v0 = vld [vmem:[#allocation4 + $0x10] sm:$0xff]  ;;  %v618_v1 = vld [vmem:[#allocation4] sm:$0xff]  ;;  %s599_s13 = smov 16   ;;  %vm132_vm0 = vcmask 1047680  }
   0x7   :  { %139 = vrot.lane.b32.xlu1 %v616_v0, %s599_s13  ;;  %133 = vrot.lane.b32.xlu0 %v618_v1, %s599_s13  ;;  %v624_v2 = vld [vmem:[#allocation4 + $0x20] sm:$0xff]  ;;  %v628_v3 = vld [vmem:[#allocation4 + $0x8] sm:$0xff]  ;;  %v630_v4 = vld [vmem:[#allocation4 + $0x18] sm:$0xff]  ;;  %s600_s0 = smov 127   ;;  %vm359_vm3 = vcmask 130048   ;;  %vm46_vm4 = vcmask 122880  }
   0x8   :  { %145 = vrot.lane.b32.xlu2 %v624_v2, %s599_s13  ;;  %v632_v5 = vld [vmem:[#allocation4 + $0x28] sm:$0xff]  ;;  %v640_v6 = vld [vmem:[#allocation4 + $0x30] sm:$0xff]  ;;  %v642_v7 = vld [vmem:[#allocation4 + $0x38] sm:$0xff]  ;;  %47 = vst.msk [vmem:[#allocation3] sm:$0x1] %vm46_vm4, %v618_v1  ;;  %vm490_vm6 = vcmask 130055  }
   0x9   :  { %v644_v8 = vld [vmem:[#allocation4 + $0x40] sm:$0xff]  ;;  %v652_v9 = vld [vmem:[#allocation4 + $0x48] sm:$0xff]  ;;  %v654_v10 = vld [vmem:[#allocation4 + $0x50] sm:$0xff]  ;;  %48 = vst.msk [vmem:[#allocation3 + $0x1] sm:$0x1] %vm46_vm4, %v616_v0  ;;  %s602_s18 = smov [#allocation7]  }
   0xa   :  { %v656_v11 = vld [vmem:[#allocation4 + $0x58] sm:$0xff]  ;;  %v664_v12 = vld [vmem:[#allocation4 + $0x60] sm:$0xff]  ;;  %v666_v13 = vld [vmem:[#allocation4 + $0x68] sm:$0xff]  ;;  %49 = vst.msk [vmem:[#allocation3 + $0x2] sm:$0x1] %vm46_vm4, %v624_v2  ;;  %s519_s19 = sshll.u32 %s602_s18, 4  ;;  %s520_s19 = int_to_ptr.vmem [resolvable:$true] %s519_s19 }
   0xb   :  { %v668_v14 = vld [vmem:[#allocation4 + $0x70] sm:$0xff]  ;;  %v676_v15 = vld [vmem:[#allocation4 + $0x78] sm:$0xff]  ;;  %50 = vst.msk [vmem:[#allocation3 + $0x3] sm:$0x1] %vm46_vm4, %v640_v6  ;;  %s521_s22 = sshll.u32 %s1000_s1, 4  ;;  %s522_s22 = int_to_ptr.hbm [resolvable:$true] %s521_s22 }
   0xc   :  { %51 = vst.msk [vmem:[#allocation3 + $0x4] sm:$0x1] %vm46_vm4, %v644_v8 }
   0xd   :  { %52 = vst.msk [vmem:[#allocation3 + $0x5] sm:$0x1] %vm46_vm4, %v654_v10 }
   0xe   :  { %53 = vst.msk [vmem:[#allocation3 + $0x6] sm:$0x1] %vm46_vm4, %v664_v12 }
   0xf   :  { %136 = vrot.lane.b32.xlu0 %v628_v3, %s599_s13  ;;  %142 = vrot.lane.b32.xlu1 %v630_v4, %s599_s13  ;;  %54 = vst.msk [vmem:[#allocation3 + $0x7] sm:$0x1] %vm46_vm4, %v668_v14 }
  0x10   :  { %148 = vrot.lane.b32.xlu2 %v632_v5, %s599_s13 }
  0x17   :  { %151 = vrot.lane.b32.xlu0 %v640_v6, %s599_s13  ;;  %154 = vrot.lane.b32.xlu1 %v642_v7, %s599_s13 }
  0x18   :  { %157 = vrot.lane.b32.xlu2 %v644_v8, %s599_s13 }
  0x1f   :  { %160 = vrot.lane.b32.xlu0 %v652_v9, %s599_s13  ;;  %163 = vrot.lane.b32.xlu1 %v654_v10, %s599_s13 }
  0x20   :  { %166 = vrot.lane.b32.xlu2 %v656_v11, %s599_s13 }
  0x27   :  { %169 = vrot.lane.b32.xlu0 %v664_v12, %s599_s13  ;;  %172 = vrot.lane.b32.xlu1 %v666_v13, %s599_s13 }
  0x28   :  { %175 = vrot.lane.b32.xlu2 %v668_v14, %s599_s13 }
  0x2f   :  { %178 = vrot.lane.b32.xlu0 %v676_v15, %s599_s13 }
  0x62   :  { %v146_v16 = vpop.permute.xlu2 %145 }
  0x63   :  { %v147_v31 = vsel %vm132_vm0, %v146_v16, %v624_v2 }
  0x6a   :  { %v149_v17 = vpop.permute.xlu2 %148 }
  0x6b   :  { %v150_v22 = vsel %vm132_vm0, %v149_v17, %v632_v5 }
  0x72   :  { %v158_v23 = vpop.permute.xlu2 %157 }
  0x73   :  { %v159_v28 = vsel %vm132_vm0, %v158_v23, %v644_v8 }
  0x79   :  { %v140_v18 = vpop.permute.xlu1 %139  ;;  %v134_v19 = vpop.permute.xlu0 %133 }
  0x7a   :  { %v141_v20 = vsel %vm132_vm0, %v140_v18, %v616_v0  ;;  %v135_v21 = vsel %vm132_vm0, %v134_v19, %v618_v1  ;;  %v167_v33 = vpop.permute.xlu2 %166 }
  0x7b   :  { %185 = vrot.lane.b32.xlu0 %v141_v20, %s599_s13  ;;  %181 = vrot.lane.b32.xlu1 %v135_v21, %s599_s13  ;;  %v168_v34 = vsel %vm132_vm0, %v167_v33, %v656_v11  ;;  %v62_v33 = vrot.slane %v618_v1, 1 }
  0x81   :  { %v137_v24 = vpop.permute.xlu0 %136  ;;  %v143_v25 = vpop.permute.xlu1 %142 }
  0x82   :  { %v138_v26 = vsel %vm132_vm0, %v137_v24, %v628_v3  ;;  %v144_v27 = vsel %vm132_vm0, %v143_v25, %v630_v4  ;;  %v176_v39 = vpop.permute.xlu2 %175 }
  0x83   :  { %191 = vrot.lane.b32.xlu0 %v150_v22, %s599_s13  ;;  %183 = vrot.lane.b32.xlu2 %v138_v26, %s599_s13  ;;  %v177_v40 = vsel %vm132_vm0, %v176_v39, %v668_v14 }
  0x84   :  { %187 = vrot.lane.b32.xlu1 %v144_v27, %s599_s13 }
  0x89   :  { %v152_v29 = vpop.permute.xlu0 %151  ;;  %v155_v30 = vpop.permute.xlu1 %154 }
  0x8a   :  { %v153_v32 = vsel %vm132_vm0, %v152_v29, %v640_v6  ;;  %v156_v35 = vsel %vm132_vm0, %v155_v30, %v642_v7 }
  0x8b   :  { %197 = vrot.lane.b32.xlu0 %v159_v28, %s599_s13  ;;  %189 = vrot.lane.b32.xlu2 %v147_v31, %s599_s13 }
  0x8c   :  { %193 = vrot.lane.b32.xlu1 %v153_v32, %s599_s13  ;;  %v55_v32 = vlaneseq }
  0x91   :  { %v161_v36 = vpop.permute.xlu0 %160  ;;  %v164_v38 = vpop.permute.xlu1 %163 }
  0x92   :  { %v162_v37 = vsel %vm132_vm0, %v161_v36, %v652_v9  ;;  %v165_v41 = vsel %vm132_vm0, %v164_v38, %v654_v10  ;;  %v63_v36 = vrot.slane %v616_v0, 1 }
  0x93   :  { %203 = vrot.lane.b32.xlu0 %v168_v34, %s599_s13  ;;  %195 = vrot.lane.b32.xlu2 %v156_v35, %s599_s13  ;;  %v70_v34 = vrot.slane %v628_v3, 1  ;;  %v778_v35 = vshrl.u32 %v55_v32, 7 }
  0x94   :  { %199 = vrot.lane.b32.xlu1 %v162_v37, %s599_s13  ;;  %v71_v37 = vrot.slane %v630_v4, 1 }
  0x95   :  { %vm78_vm1 = vcmp.lt.s32.totalorder %v778_v35, 7  ;;  %v784_v38 = vadd.s32 8, %v778_v35 }
  0x96   :  { %v87_v39 = vsel %vm78_vm1, %v70_v34, %v62_v33 }
  0x97   :  { %vm61_vm2 = vcmp.lt.s32.totalorder %v784_v38, 15 }
  0x99   :  { %v170_v42 = vpop.permute.xlu0 %169  ;;  %v173_v44 = vpop.permute.xlu1 %172 }
  0x9a   :  { %v171_v43 = vsel %vm132_vm0, %v170_v42, %v664_v12  ;;  %v174_v45 = vsel %vm132_vm0, %v173_v44, %v666_v13  ;;  %v72_v44 = vrot.slane %v632_v5, 1 }
  0x9b   :  { %209 = vrot.lane.b32.xlu0 %v177_v40, %s599_s13  ;;  %201 = vrot.lane.b32.xlu2 %v165_v41, %s599_s13  ;;  %v79_v40 = vsel %vm78_vm1, %v62_v33, %v70_v34  ;;  %v96_v41 = vsub.f32 %v628_v3, %v87_v39 }
  0x9c   :  { %205 = vrot.lane.b32.xlu1 %v171_v43, %s599_s13  ;;  %v95_v42 = vsub.f32 %v618_v1, %v79_v40  ;;  %v64_v43 = vrot.slane %v624_v2, 1 }
  0xa1   :  { %v179_v46 = vpop.permute.xlu0 %178 }
  0xa2   :  { %v180_v47 = vsel %vm132_vm0, %v179_v46, %v676_v15  ;;  %v116_v46 = vsel %vm61_vm2, %v96_v41, 0.0 }
  0xa3   :  { %207 = vrot.lane.b32.xlu2 %v174_v45, %s599_s13  ;;  %v80_v45 = vsel %vm78_vm1, %v63_v36, %v71_v37 }
  0xa4   :  { %211 = vrot.lane.b32.xlu1 %v180_v47, %s599_s13  ;;  %v88_v47 = vsel %vm78_vm1, %v71_v37, %v63_v36  ;;  %v839_v36 = vand.u32 127, %v55_v32  ;;  %v67_v32 = vrot.slane %v654_v10, 1 }
  0xa6   :  { %vm131_vm5 = vcmp.lt.s32.totalorder %v839_v36, 15  ;;  %vm500_vm7 = vcmp.eq.s32.totalorder %v839_v36, 0  ;;  %vm503_vm8 = vcmp.eq.s32.totalorder %v839_v36, 1 }
  0xdd   :  { %v184_v48 = vpop.permute.xlu2 %183 }
  0xde   :  { %v214_v49 = vsel %vm132_vm0, %v184_v48, %v628_v3  ;;  %v97_v48 = vsub.f32 %v616_v0, %v80_v45 }
  0xdf   :  { %247 = vrot.lane.b32.xlu0 %v214_v49, %s600_s0  ;;  %v343_v49 = vand.u32 2147483647, %v95_v42 }
  0xe5   :  { %v190_v50 = vpop.permute.xlu2 %189 }
  0xe6   :  { %v217_v51 = vsel %vm132_vm0, %v190_v50, %v624_v2  ;;  %v344_v50 = vand.u32 2147483647, %v116_v46 }
  0xe7   :  { %253 = vrot.lane.b32.xlu0 %v217_v51, %s600_s0  ;;  %v98_v51 = vsub.f32 %v630_v4, %v88_v47 }
  0xed   :  { %v186_v52 = vpop.permute.xlu0 %185  ;;  %v196_v53 = vpop.permute.xlu2 %195 }
  0xee   :  { %v215_v54 = vsel %vm132_vm0, %v186_v52, %v616_v0  ;;  %v182_v55 = vpop.permute.xlu1 %181  ;;  %v220_v56 = vsel %vm132_vm0, %v196_v53, %v642_v7  ;;  %v345_v52 = vand.u32 2147483647, %v97_v48  ;;  %v360_v53 = vsel %vm359_vm3, %v343_v49, 0.0 }
  0xef   :  { %249 = vrot.lane.b32.xlu1 %v215_v54, %s600_s0  ;;  %259 = vrot.lane.b32.xlu0 %v220_v56, %s600_s0  ;;  %v213_v57 = vsel %vm132_vm0, %v182_v55, %v618_v1  ;;  %v361_v54 = vsel %vm359_vm3, %v344_v50, 0.0  ;;  %v73_v55 = vrot.slane %v642_v7, 1  ;;  %v81_v56 = vsel %vm78_vm1, %v64_v43, %v72_v44 }
  0xf0   :  { %245 = vrot.lane.b32.xlu2 %v213_v57, %s600_s0  ;;  %v118_v57 = vsel %vm61_vm2, %v98_v51, 0.0 }
  0xf5   :  { %v192_v58 = vpop.permute.xlu0 %191  ;;  %v202_v59 = vpop.permute.xlu2 %201 }
  0xf6   :  { %v218_v60 = vsel %vm132_vm0, %v192_v58, %v632_v5  ;;  %v223_v61 = vsel %vm132_vm0, %v202_v59, %v654_v10  ;;  %v188_v62 = vpop.permute.xlu1 %187  ;;  %v362_v58 = vadd.f32 %v361_v54, %v360_v53  ;;  %v89_v59 = vsel %vm78_vm1, %v72_v44, %v64_v43 }
  0xf7   :  { %255 = vrot.lane.b32.xlu1 %v218_v60, %s600_s0  ;;  %265 = vrot.lane.b32.xlu0 %v223_v61, %s600_s0  ;;  %v216_v63 = vsel %vm132_vm0, %v188_v62, %v630_v4  ;;  %v99_v60 = vsub.f32 %v624_v2, %v81_v56  ;;  %v346_v61 = vand.u32 2147483647, %v118_v57  ;;  %v363_v62 = vsel %vm359_vm3, %v345_v52, 0.0 }
  0xf8   :  { %251 = vrot.lane.b32.xlu2 %v216_v63, %s600_s0  ;;  %v65_v63 = vrot.slane %v640_v6, 1  ;;  %v75_v44 = vrot.slane %v656_v11, 1 }
  0xfa   :  { %v84_v50 = vsel %vm78_vm1, %v67_v32, %v75_v44 }
  0xfb   :  { %v105_v56 = vsub.f32 %v654_v10, %v84_v50  ;;  %v328_v50 = vld [vmem:[#allocation3 + $0x1] sm:$0x1] }
  0xfc   :  { %492 = vst.msk [vmem:[#allocation3 - $0x6] sm:$0x80] %vm490_vm6, %v630_v4 }
  0xfd   :  { %v198_v16 = vpop.permute.xlu0 %197  ;;  %v208_v17 = vpop.permute.xlu2 %207 }
  0xfe   :  { %v221_v18 = vsel %vm132_vm0, %v198_v16, %v644_v8  ;;  %v226_v19 = vsel %vm132_vm0, %v208_v17, %v666_v13  ;;  %v194_v20 = vpop.permute.xlu1 %193  ;;  %v100_v16 = vsub.f32 %v632_v5, %v89_v59  ;;  %v364_v17 = vadd.f32 %v363_v62, %v362_v58 }
  0xff   :  { %261 = vrot.lane.b32.xlu1 %v221_v18, %s600_s0  ;;  %271 = vrot.lane.b32.xlu0 %v226_v19, %s600_s0  ;;  %v219_v21 = vsel %vm132_vm0, %v194_v20, %v640_v6  ;;  %v347_v18 = vand.u32 2147483647, %v99_v60  ;;  %v365_v19 = vsel %vm359_vm3, %v346_v61, 0.0  ;;  %v74_v20 = vrot.slane %v652_v9, 1 }
 0x100   :  { %257 = vrot.lane.b32.xlu2 %v219_v21, %s600_s0  ;;  %v68_v58 = vrot.slane %v664_v12, 1  ;;  %v76_v59 = vrot.slane %v666_v13, 1 }
 0x105   :  { %v204_v22 = vpop.permute.xlu0 %203 }
 0x106   :  { %v224_v23 = vsel %vm132_vm0, %v204_v22, %v656_v11  ;;  %v200_v24 = vpop.permute.xlu1 %199  ;;  %v82_v22 = vsel %vm78_vm1, %v65_v63, %v73_v55 }
 0x107   :  { %267 = vrot.lane.b32.xlu1 %v224_v23, %s600_s0  ;;  %v222_v25 = vsel %vm132_vm0, %v200_v24, %v652_v9  ;;  %v120_v23 = vsel %vm61_vm2, %v100_v16, 0.0  ;;  %v366_v24 = vadd.f32 %v365_v19, %v364_v17  ;;  %v93_v19 = vsel %vm78_vm1, %v76_v59, %v68_v58 }
 0x108   :  { %263 = vrot.lane.b32.xlu2 %v222_v25, %s600_s0  ;;  %v90_v25 = vsel %vm78_vm1, %v73_v55, %v65_v63  ;;  %v92_v55 = vsel %vm78_vm1, %v75_v44, %v67_v32  ;;  %v85_v63 = vsel %vm78_vm1, %v68_v58, %v76_v59 }
 0x109   :  { %v106_v60 = vsub.f32 %v656_v11, %v92_v55 }
 0x10b   :  { %v126_v16 = vsel %vm61_vm2, %v106_v60, 0.0  ;;  %v330_v60 = vld [vmem:[#allocation3 + $0x3] sm:$0x1] }
 0x10c   :  { %494 = vst.msk [vmem:[#allocation3 - $0x4] sm:$0x80] %vm490_vm6, %v642_v7 }
 0x10d   :  { %v210_v26 = vpop.permute.xlu0 %209 }
 0x10e   :  { %v227_v27 = vsel %vm132_vm0, %v210_v26, %v668_v14  ;;  %v206_v28 = vpop.permute.xlu1 %205  ;;  %v101_v26 = vsub.f32 %v640_v6, %v82_v22 }
 0x10f   :  { %273 = vrot.lane.b32.xlu1 %v227_v27, %s600_s0  ;;  %v225_v29 = vsel %vm132_vm0, %v206_v28, %v664_v12  ;;  %v348_v27 = vand.u32 2147483647, %v120_v23  ;;  %v66_v28 = vrot.slane %v644_v8, 1  ;;  %v69_v23 = vrot.slane %v668_v14, 1 }
 0x110   :  { %269 = vrot.lane.b32.xlu2 %v225_v29, %s600_s0  ;;  %v102_v29 = vsub.f32 %v642_v7, %v90_v25 }
 0x111   :  { %v369_v34 = vsel %vm359_vm3, %v348_v27, 0.0  ;;  %v83_v37 = vsel %vm78_vm1, %v66_v28, %v74_v20  ;;  %v91_v40 = vsel %vm78_vm1, %v74_v20, %v66_v28  ;;  %v107_v20 = vsub.f32 %v664_v12, %v85_v63 }
 0x112   :  { %v122_v39 = vsel %vm61_vm2, %v102_v29, 0.0  ;;  %v103_v41 = vsub.f32 %v644_v8, %v83_v37  ;;  %v104_v45 = vsub.f32 %v652_v9, %v91_v40  ;;  %v354_v27 = vand.u32 2147483647, %v126_v16 }
 0x113   :  { %v350_v42 = vand.u32 2147483647, %v122_v39  ;;  %v336_v63 = vsub.f32 %v328_v50, %v616_v0 }
 0x114   :  { %v351_v47 = vand.u32 2147483647, %v103_v41  ;;  %v124_v51 = vsel %vm61_vm2, %v104_v45, 0.0  ;;  %v327_v45 = vld [vmem:[#allocation3] sm:$0x1] }
 0x115   :  { %v373_v53 = vsel %vm359_vm3, %v350_v42, 0.0  ;;  %v352_v61 = vand.u32 2147483647, %v124_v51  ;;  %v329_v51 = vld [vmem:[#allocation3 + $0x2] sm:$0x1]  ;;  %v335_v55 = vsub.f32 %v327_v45, %v618_v1 }
 0x116   :  { %v212_v30 = vpop.permute.xlu1 %211  ;;  %v375_v17 = vsel %vm359_vm3, %v351_v47, 0.0  ;;  %v381_v47 = vsel %vm359_vm3, %v354_v27, 0.0  ;;  %v337_v16 = vsub.f32 %v329_v51, %v624_v2  ;;  %491 = vst.msk [vmem:[#allocation3 - $0x7] sm:$0x80] %vm490_vm6, %v628_v3 }
 0x117   :  { %v228_v31 = vsel %vm132_vm0, %v212_v30, %v676_v15  ;;  %v367_v30 = vsel %vm359_vm3, %v347_v18, 0.0  ;;  %v377_v29 = vsel %vm359_vm3, %v352_v61, 0.0  ;;  %493 = vst.msk [vmem:[#allocation3 - $0x5] sm:$0x80] %vm490_vm6, %v632_v5 }
 0x118   :  { %275 = vrot.lane.b32.xlu2 %v228_v31, %s600_s0  ;;  %v349_v31 = vand.u32 2147483647, %v101_v26  ;;  %v368_v33 = vadd.f32 %v367_v30, %v366_v24  ;;  %v77_v24 = vrot.slane %v676_v15, 1  ;;  %v108_v26 = vsub.f32 %v666_v13, %v93_v19 }
 0x11a   :  { %v370_v43 = vadd.f32 %v369_v34, %v368_v33  ;;  %v371_v48 = vsel %vm359_vm3, %v349_v31, 0.0  ;;  %v86_v33 = vsel %vm78_vm1, %v69_v23, %v77_v24  ;;  %v355_v34 = vand.u32 2147483647, %v107_v20  ;;  %v331_v20 = vld [vmem:[#allocation3 + $0x4] sm:$0x1] }
 0x11b   :  { %v94_v39 = vsel %vm78_vm1, %v77_v24, %v69_v23  ;;  %v109_v40 = vsub.f32 %v668_v14, %v86_v33  ;;  %v128_v41 = vsel %vm61_vm2, %v108_v26, 0.0  ;;  %v332_v23 = vld [vmem:[#allocation3 + $0x5] sm:$0x1]  ;;  %v338_v24 = vsub.f32 %v330_v60, %v640_v6  ;;  %495 = vst.msk [vmem:[#allocation3 - $0x3] sm:$0x80] %vm490_vm6, %v652_v9 }
 0x11c   :  { %v372_v52 = vadd.f32 %v371_v48, %v370_v43  ;;  %v110_v32 = vsub.f32 %v676_v15, %v94_v39  ;;  %v402_v33 = vand.u32 2147483647, %v337_v16  ;;  %v333_v39 = vld [vmem:[#allocation3 + $0x6] sm:$0x1]  ;;  %496 = vst.msk [vmem:[#allocation3 - $0x2] sm:$0x80] %vm490_vm6, %v656_v11 }
 0x11d   :  { %497 = vst.msk [vmem:[#allocation3 - $0x1] sm:$0x80] %vm490_vm6, %v666_v13 }
 0x11e   :  { %v374_v62 = vadd.f32 %v373_v53, %v372_v52  ;;  %v130_v35 = vsel %vm61_vm2, %v110_v32, 0.0  ;;  %v357_v53 = vand.u32 2147483647, %v109_v40  ;;  %v340_v40 = vsub.f32 %v332_v23, %v654_v10 }
 0x11f   :  { %v358_v58 = vand.u32 2147483647, %v130_v35  ;;  %v341_v35 = vsub.f32 %v333_v39, %v664_v12  ;;  %v412_v51 = vsel %vm46_vm4, %v402_v33, 0.0 }
 0x120   :  { %v376_v28 = vadd.f32 %v375_v17, %v374_v62 }
 0x122   :  { %v378_v44 = vadd.f32 %v377_v29, %v376_v28 }
 0x14a   :  { %v246_v21 = vpop.permute.xlu2 %245 }
 0x14b   :  { %v293_v54 = vsub.f32 %v618_v1, %v246_v21  ;;  %v353_v21 = vand.u32 2147483647, %v105_v56 }
 0x14d   :  { %v311_v18 = vsel %vm131_vm5, %v293_v54, 0.0  ;;  %v379_v42 = vsel %vm359_vm3, %v353_v21, 0.0  ;;  %v383_v54 = vsel %vm359_vm3, %v355_v34, 0.0 }
 0x14e   :  { %v434_v30 = vand.u32 2147483647, %v311_v18 }
 0x150   :  { %v450_v48 = vsel %vm359_vm3, %v434_v30, 0.0  ;;  %v339_v30 = vsub.f32 %v331_v20, %v644_v8 }
 0x151   :  { %v248_v46 = vpop.permute.xlu0 %247 }
 0x152   :  { %v252_v49 = vpop.permute.xlu2 %251  ;;  %v294_v57 = vsub.f32 %v628_v3, %v248_v46  ;;  %v356_v46 = vand.u32 2147483647, %v128_v41 }
 0x153   :  { %v296_v31 = vsub.f32 %v630_v4, %v252_v49  ;;  %v380_v49 = vadd.f32 %v379_v42, %v378_v44 }
 0x154   :  { %v312_v22 = vsel %vm131_vm5, %v294_v57, 0.0  ;;  %v385_v62 = vsel %vm359_vm3, %v356_v46, 0.0 }
 0x155   :  { %v435_v43 = vand.u32 2147483647, %v312_v22  ;;  %v314_v52 = vsel %vm131_vm5, %v296_v31, 0.0  ;;  %v382_v59 = vadd.f32 %v381_v47, %v380_v49  ;;  %v387_v22 = vsel %vm359_vm3, %v357_v53, 0.0  ;;  %v334_v47 = vld [vmem:[#allocation3 + $0x7] sm:$0x1] }
 0x156   :  { %v437_v18 = vand.u32 2147483647, %v314_v52  ;;  %v401_v31 = vand.u32 2147483647, %v336_v63  ;;  %v404_v49 = vand.u32 2147483647, %v339_v30 }
 0x157   :  { %v451_v56 = vsel %vm359_vm3, %v435_v43, 0.0  ;;  %v384_v19 = vadd.f32 %v383_v54, %v382_v59  ;;  %v403_v43 = vand.u32 2147483647, %v338_v24  ;;  %v405_v59 = vand.u32 2147483647, %v340_v40 }
 0x158   :  { %v452_v21 = vadd.f32 %v451_v56, %v450_v48  ;;  %v455_v34 = vsel %vm359_vm3, %v437_v18, 0.0  ;;  %v410_v50 = vsel %vm46_vm4, %v401_v31, 0.0  ;;  %v416_v18 = vsel %vm46_vm4, %v404_v49, 0.0  ;;  %498 = vst.msk [vmem:[#allocation3] sm:$0x80] %vm490_vm6, %v676_v15 }
 0x159   :  { %v254_v25 = vpop.permute.xlu0 %253  ;;  %v386_v27 = vadd.f32 %v385_v62, %v384_v19  ;;  %v414_v60 = vsel %vm46_vm4, %v403_v43, 0.0 }
 0x15a   :  { %v258_v37 = vpop.permute.xlu2 %257  ;;  %v297_v57 = vsub.f32 %v624_v2, %v254_v25  ;;  %v400_v25 = vand.u32 2147483647, %v335_v55 }
 0x15b   :  { %v299_v1 = vsub.f32 %v640_v6, %v258_v37  ;;  %v388_v37 = vadd.f32 %v387_v22, %v386_v27 }
 0x15c   :  { %v315_v26 = vsel %vm131_vm5, %v297_v57, 0.0  ;;  %v409_v32 = vsel %vm46_vm4, %v400_v25, 0.0  ;;  %v418_v25 = vsel %vm46_vm4, %v405_v59, 0.0 }
 0x15d   :  { %v317_v6 = vsel %vm131_vm5, %v299_v1, 0.0  ;;  %v438_v44 = vand.u32 2147483647, %v315_v26  ;;  %v411_v55 = vadd.f32 %v410_v50, %v409_v32 }
 0x15e   :  { %v440_v54 = vand.u32 2147483647, %v317_v6 }
 0x15f   :  { %v413_v63 = vadd.f32 %v412_v51, %v411_v55 }
 0x160   :  { %v461_v19 = vsel %vm359_vm3, %v440_v54, 0.0 }
 0x161   :  { %v250_v38 = vpop.permute.xlu1 %249  ;;  %v260_v61 = vpop.permute.xlu0 %259 }
 0x162   :  { %v295_v17 = vsub.f32 %v616_v0, %v250_v38  ;;  %v389_v0 = vsel %vm359_vm3, %v358_v58, 0.0  ;;  %v264_v29 = vpop.permute.xlu2 %263  ;;  %v300_v42 = vsub.f32 %v642_v7, %v260_v61  ;;  %v342_v58 = vsub.f32 %v334_v47, %v668_v14 }
 0x163   :  { %v390_v46 = vadd.f32 %v389_v0, %v388_v37  ;;  %v457_v38 = vsel %vm359_vm3, %v438_v44, 0.0  ;;  %v302_v62 = vsub.f32 %v652_v9, %v264_v29 }
 0x164   :  { %v313_v2 = vsel %vm131_vm5, %v295_v17, 0.0  ;;  %v318_v56 = vsel %vm131_vm5, %v300_v42, 0.0  ;;  %v406_v17 = vand.u32 2147483647, %v341_v35  ;;  %v407_v24 = vand.u32 2147483647, %v342_v58 }
 0x165   :  { %v436_v28 = vand.u32 2147483647, %v313_v2  ;;  %391 = vadd.xlane.f32.xlu0 %v390_v46  ;;  %v441_v20 = vand.u32 2147483647, %v318_v56  ;;  %v320_v2 = vsel %vm131_vm5, %v302_v62, 0.0 }
 0x166   :  { %v422_v33 = vsel %vm46_vm4, %v407_v24, 0.0 }
 0x167   :  { %v453_v41 = vsel %vm359_vm3, %v436_v28, 0.0  ;;  %v420_v28 = vsel %vm46_vm4, %v406_v17, 0.0  ;;  %v463_v31 = vsel %vm359_vm3, %v441_v20, 0.0 }
 0x168   :  { %v454_v45 = vadd.f32 %v453_v41, %v452_v21  ;;  %v415_v21 = vadd.f32 %v414_v60, %v413_v63 }
 0x169   :  { %v256_v48 = vpop.permute.xlu1 %255  ;;  %v266_v57 = vpop.permute.xlu0 %265 }
 0x16a   :  { %v456_v52 = vadd.f32 %v455_v34, %v454_v45  ;;  %v298_v53 = vsub.f32 %v632_v5, %v256_v48  ;;  %v270_v23 = vpop.permute.xlu2 %269  ;;  %v303_v27 = vsub.f32 %v654_v10, %v266_v57  ;;  %v417_v0 = vadd.f32 %v416_v18, %v415_v21 }
 0x16b   :  { %v443_v10 = vand.u32 2147483647, %v320_v2 }
 0x16c   :  { %v316_v61 = vsel %vm131_vm5, %v298_v53, 0.0  ;;  %v458_v1 = vadd.f32 %v457_v38, %v456_v52  ;;  %v419_v4 = vadd.f32 %v418_v25, %v417_v0  ;;  %v321_v7 = vsel %vm131_vm5, %v303_v27, 0.0 }
 0x16d   :  { %v439_v16 = vand.u32 2147483647, %v316_v61  ;;  %v467_v41 = vsel %vm359_vm3, %v443_v10, 0.0  ;;  %v444_v42 = vand.u32 2147483647, %v321_v7 }
 0x16e   :  { %v421_v34 = vadd.f32 %v420_v28, %v419_v4 }
 0x16f   :  { %v459_v22 = vsel %vm359_vm3, %v439_v16, 0.0  ;;  %v469_v48 = vsel %vm359_vm3, %v444_v42, 0.0 }
 0x170   :  { %v460_v26 = vadd.f32 %v459_v22, %v458_v1  ;;  %v423_v39 = vadd.f32 %v422_v33, %v421_v34 }
 0x171   :  { %v262_v3 = vpop.permute.xlu1 %261  ;;  %v272_v6 = vpop.permute.xlu0 %271 }
 0x172   :  { %v462_v29 = vadd.f32 %v461_v19, %v460_v26  ;;  %v301_v30 = vsub.f32 %v644_v8, %v262_v3  ;;  %v305_v8 = vsub.f32 %v664_v12, %v270_v23  ;;  %v306_v32 = vsub.f32 %v666_v13, %v272_v6  ;;  %424 = vadd.xlane.f32.xlu1 %v423_v39  ;;  %v276_v45 = vpop.permute.xlu2 %275 }
 0x173   :  { %v308_v51 = vsub.f32 %v676_v15, %v276_v45 }
 0x174   :  { %v319_v5 = vsel %vm131_vm5, %v301_v30, 0.0  ;;  %v464_v37 = vadd.f32 %v463_v31, %v462_v29  ;;  %v323_v12 = vsel %vm131_vm5, %v305_v8, 0.0  ;;  %v324_v50 = vsel %vm131_vm5, %v306_v32, 0.0 }
 0x175   :  { %v442_v9 = vand.u32 2147483647, %v319_v5  ;;  %v446_v35 = vand.u32 2147483647, %v323_v12  ;;  %v447_v55 = vand.u32 2147483647, %v324_v50 }
 0x176   :  { %v601_v5 = vmov 0.0  }
 0x177   :  { %v465_v40 = vsel %vm359_vm3, %v442_v9, 0.0  ;;  %v473_v54 = vsel %vm359_vm3, %v446_v35, 0.0  ;;  %v475_v60 = vsel %vm359_vm3, %v447_v55, 0.0  ;;  %45 = vst [vmem:[#allocation2] sm:$0x1] %v601_v5 }
 0x178   :  { %v466_v43 = vadd.f32 %v465_v40, %v464_v37 }
 0x179   :  { %v268_v44 = vpop.permute.xlu1 %267 }
 0x17a   :  { %v468_v46 = vadd.f32 %v467_v41, %v466_v43  ;;  %v304_v47 = vsub.f32 %v656_v11, %v268_v44  ;;  %v326_v11 = vsel %vm131_vm5, %v308_v51, 0.0 }
 0x17b   :  { %v449_v38 = vand.u32 2147483647, %v326_v11 }
 0x17c   :  { %v322_v49 = vsel %vm131_vm5, %v304_v47, 0.0  ;;  %v470_v53 = vadd.f32 %v469_v48, %v468_v46 }
 0x17d   :  { %v445_v52 = vand.u32 2147483647, %v322_v49  ;;  %v479_v16 = vsel %vm359_vm3, %v449_v38, 0.0 }
 0x17e   :  { %v499_v9 = vld [vmem:[#allocation2] sm:$0x1] }
 0x17f   :  { %v471_v13 = vsel %vm359_vm3, %v445_v52, 0.0 }
 0x180   :  { %v472_v56 = vadd.f32 %v471_v13, %v470_v53 }
 0x181   :  { %v274_v57 = vpop.permute.xlu1 %273 }
 0x182   :  { %v474_v58 = vadd.f32 %v473_v54, %v472_v56  ;;  %v307_v59 = vsub.f32 %v668_v14, %v274_v57 }
 0x184   :  { %v325_v15 = vsel %vm131_vm5, %v307_v59, 0.0  ;;  %v476_v62 = vadd.f32 %v475_v60, %v474_v58 }
 0x185   :  { %v448_v61 = vand.u32 2147483647, %v325_v15 }
 0x187   :  { %v477_v63 = vsel %vm359_vm3, %v448_v61, 0.0 }
 0x188   :  { %v478_v17 = vadd.f32 %v477_v63, %v476_v62 }
 0x18a   :  { %v480_v18 = vadd.f32 %v479_v16, %v478_v17 }
 0x18c   :  { %481 = vadd.xlane.f32.xlu2 %v480_v18 }
 0x1d8   :  { %v392_v1 = vpop.xlane.xlu0 %391 }
 0x1d9   :  { %v393_v19 = vrot.slane %v392_v1, 4 }
 0x1db   :  { %v394_v20 = vadd.f32 %v393_v19, %v392_v1 }
 0x1dd   :  { %v395_v21 = vrot.slane %v394_v20, 2 }
 0x1df   :  { %v396_v14 = vadd.f32 %v395_v21, %v394_v20 }
 0x1e1   :  { %v397_v22 = vrot.slane %v396_v14, 1 }
 0x1e3   :  { %v398_v23 = vadd.f32 %v397_v22, %v396_v14 }
 0x1e5   :  { %531 = vpush %v398_v23  ;;  %v425_v24 = vpop.xlane.xlu1 %424 }
 0x1e6   :  { %v426_v25 = vrot.slane %v425_v24, 4 }
 0x1e8   :  { %v427_v26 = vadd.f32 %v426_v25, %v425_v24 }
 0x1ea   :  { %v428_v2 = vrot.slane %v427_v26, 2 }
 0x1ec   :  { %v429_v27 = vadd.f32 %v428_v2, %v427_v26 }
 0x1ee   :  { %v430_v0 = vrot.slane %v429_v27, 1 }
 0x1f0   :  { %v431_v3 = vadd.f32 %v430_v0, %v429_v27 }
 0x1f2   :  { %533 = vpush %v431_v3 }
 0x1ff   :  { %v482_v28 = vpop.xlane.xlu2 %481 }
 0x200   :  { %v483_v29 = vrot.slane %v482_v28, 4 }
 0x202   :  { %v484_v30 = vadd.f32 %v483_v29, %v482_v28 }
 0x204   :  { %v485_v4 = vrot.slane %v484_v30, 2 }
 0x206   :  { %v486_v31 = vadd.f32 %v485_v4, %v484_v30 }
 0x208   :  { %v487_v10 = vrot.slane %v486_v31, 1 }
 0x20a   :  { %v488_v33 = vadd.f32 %v487_v10, %v486_v31 }
 0x20c   :  { %535 = vpush %v488_v33 }
 0x216   :  { %s532_s14 = spop %531 }
 0x223   :  { %s534_s15 = spop %533 }
 0x224   :  { %s433_s16 = sadd.f32 %s534_s15, %s532_s14 }
 0x226   :  { %v501_v7 = vstv %s433_s16 }
 0x227   :  { %v502_v34 = vsel %vm500_vm7, %v501_v7, 0.0 }
 0x23d   :  { %s536_s17 = spop %535 }
 0x23e   :  { %v504_v8 = vstv %s536_s17 }
 0x23f   :  { %v505_v6 = vsel %vm503_vm8, %v504_v8, 0.0 }
 0x240   :  { %v506_v37 = vadd.f32 %v505_v6, %v502_v34 }
 0x242   :  { %v507_v39 = vadd.f32 %v506_v37, %v499_v9 }
 0x244   :  { %508 = vst [vmem:[#allocation2] sm:$0x1] %v507_v39 }
 0x24b   :  { %v512_v40 = vld [vmem:[#allocation2] sm:$0x1] }
 0x24c   :  { %513 = vst [vmem:[#allocation7] sm:$0x1] %v512_v40 }
 0x24d   :  { %524 = dma.vmem_to_hbm [thread:$0]  %s520_s19, 16, %s522_s22, [#allocation6]  }
 0x24e   :  { %594 = dma.done.wait [#allocation6], 16  }
 0x24f   :  { %595 = vsyncadd [#allocation6], 4294967280 }
 0x250   :  { %529 = vsyncpa [#allocation5], 1 }
 0x251   :  { %530 = vsyncpa [#allocation6], 1 }

</bundles_post_ra>
